<compile_context>
chip_gen: v7x
topology: tpu7x:2x2x1
jax: 0.10.0
libtpu: 0.0.40
codegen_flags: <defaults>
</compile_context>

<pallas_src>
import functools

import jax
import jax.numpy as jnp
from jax.experimental import pallas as pl
from jax.experimental.pallas import tpu as pltpu


def _proto_loss_kernel(x_ref, gt_ref, embt_ref, out_ref, acc_ref, *, hw, mask_tail):
    j = pl.program_id(1)

    @pl.when(j == 0)
    def _():
        acc_ref[...] = jnp.zeros_like(acc_ref)

    num_classes = embt_ref.shape[1]
    tile_hw = x_ref.shape[2]

    gt = gt_ref[0]                                              # (1, tile_hw) int32
    classes = jax.lax.broadcasted_iota(jnp.int32, (num_classes, tile_hw), 0)
    onehot = (gt == classes).astype(jnp.float32)                # (K, tile_hw)

    # pred[c, t] = embedding[gt[t], c]  — gather realized as one MXU matmul,
    # result lands directly in the same (C, tile_hw) layout as x.
    pred = jnp.dot(embt_ref[...], onehot,
                   preferred_element_type=jnp.float32)          # (C, tile_hw)

    diff = pred - x_ref[0]                                      # (C, tile_hw)
    sq = diff * diff
    if mask_tail:
        lane = jax.lax.broadcasted_iota(jnp.int32, (1, tile_hw), 1)
        sq = jnp.where(j * tile_hw + lane < hw, sq, 0.0)
    acc_ref[...] += sq                                          # pure VPU accumulation

    @pl.when(j == pl.num_programs(1) - 1)
    def _():
        out_ref[...] = jnp.broadcast_to(jnp.sum(acc_ref[...]), out_ref.shape)


def euclidean_prototype_loss(x, gt, embedding, *, block_bytes=2 << 20):
    """x: (B, C, H, W) float32 (NCHW like PyTorch); gt: (B, H, W) or (B, 1, H, W) int.

    Returns loss of shape (1,), float32 — identical to the PyTorch module's
    training-mode forward output (init='uniform', use_feature=False).
    """
    b, c, h, w = x.shape
    num_classes = embedding.shape[0]

    if gt.ndim == 3:
        gt = gt[:, None]                                        # (B, 1, H, W)

    # F.interpolate(gt, x.shape[-2:], mode='nearest') — identity when sizes match.
    gh, gw = gt.shape[-2:]
    if (gh, gw) != (h, w):
        ri = (jnp.arange(h) * gh) // h
        ci = (jnp.arange(w) * gw) // w
        gt = gt[:, :, ri][:, :, :, ci]

    hw = h * w
    x3 = x.reshape(b, c, hw).astype(jnp.float32)                # free reshape, no transpose
    gt3 = gt.reshape(b, 1, hw).astype(jnp.int32)
    emb_t = embedding.astype(jnp.float32).T                     # (C, K), tiny, VMEM-resident

    # ~block_bytes of x per grid step; lane dim kept a multiple of 128 (or = full HW),
    # capped so small-C cases don't produce absurdly wide buffers.
    tile_cap = (block_bytes // (c * 4)) // 128 * 128
    tile_cap = max(128, min(tile_cap, 32768))
    if hw <= tile_cap:
        tile_hw, grid_hw, mask_tail = hw, 1, False
    else:
        tile_hw = tile_cap
        grid_hw = pl.cdiv(hw, tile_hw)
        mask_tail = (hw % tile_hw) != 0

    kernel = functools.partial(_proto_loss_kernel, hw=hw, mask_tail=mask_tail)

    cost = pl.CostEstimate(
        flops=int(b * hw * (2 * c * num_classes + 3 * c)),
        transcendentals=0,
        bytes_accessed=int(x3.size * 4 + gt3.size * 4 + emb_t.size * 4 + b * 128 * 4),
    )

    partials = pl.pallas_call(
        kernel,
        out_shape=jax.ShapeDtypeStruct((b, 1, 128), jnp.float32),
        grid_spec=pltpu.PrefetchScalarGridSpec(
            num_scalar_prefetch=0,
            grid=(b, grid_hw),
            in_specs=[
                pl.BlockSpec((1, c, tile_hw), lambda i, j: (i, 0, j)),   # x tile
                pl.BlockSpec((1, 1, tile_hw), lambda i, j: (i, 0, j)),   # gt tile
                pl.BlockSpec((c, num_classes), lambda i, j: (0, 0)),     # emb^T (resident)
            ],
            out_specs=pl.BlockSpec((1, 1, 128), lambda i, j: (i, 0, 0)),
            scratch_shapes=[pltpu.VMEM((c, tile_hw), jnp.float32)],
        ),
        compiler_params=pltpu.CompilerParams(
            dimension_semantics=("parallel", "arbitrary")),
        cost_estimate=cost,
    )(x3, gt3, emb_t)

    total = jnp.sum(partials[:, 0, 0])
    return (total * (1.0 / float(b * c * h * w))).reshape((1,)).astype(jnp.float32)


def _reference_loss(x, gt, embedding):
    class_feat = embedding[gt]                                  # (B, H, W, C)
    class_feat = jnp.transpose(class_feat, (0, 3, 1, 2))        # (B, C, H, W)
    return jnp.mean((class_feat - x) ** 2).reshape((1,))


if __name__ == "__main__":
    # Small shapes consistent with the module's forward.
    B, C, H, W = 2, 32, 16, 16      # embedding_dim = C = 32
    NUM_CLASSES = 8

    key = jax.random.PRNGKey(0)
    k_x, k_gt, k_emb, k_x2, k_gt2 = jax.random.split(key, 5)

    x = jax.random.normal(k_x, (B, C, H, W), dtype=jnp.float32)
    gt = jax.random.randint(k_gt, (B, H, W), 0, NUM_CLASSES, dtype=jnp.int32)

    # Deterministic parameter init, matching init='uniform':
    # embedding.weight ~ U(-1/num_classes, 1/num_classes)
    embedding = jax.random.uniform(
        k_emb, (NUM_CLASSES, C),
        minval=-1.0 / NUM_CLASSES, maxval=1.0 / NUM_CLASSES, dtype=jnp.float32)

    # TODO(synk): kmeans init (`init='kmeans'`) and `use_feature=True` mutate
    # module state in-place with data-dependent gathers; not part of this
    # stateless forward-pass kernel (module instantiated with init='uniform').

    # --- test 1: single-tile path (HW fits one lane-dense block) ---
    loss = jax.block_until_ready(euclidean_prototype_loss(x, gt, embedding))
    ref = _reference_loss(x, gt, embedding)
    assert loss.shape == (1,) and loss.dtype == jnp.float32
    assert jnp.allclose(loss, ref, rtol=1e-5, atol=1e-6), (loss, ref)

    # --- test 2: multi-tile path with a ragged (masked) lane tail ---
    H2, W2 = 16, 9                                              # HW = 144, tile = 128
    x2 = jax.random.normal(k_x2, (B, C, H2, W2), dtype=jnp.float32)
    gt2 = jax.random.randint(k_gt2, (B, H2, W2), 0, NUM_CLASSES, dtype=jnp.int32)
    loss2 = jax.block_until_ready(
        euclidean_prototype_loss(x2, gt2, embedding, block_bytes=128 * C * 4))
    ref2 = _reference_loss(x2, gt2, embedding)
    assert jnp.allclose(loss2, ref2, rtol=1e-5, atol=1e-6), (loss2, ref2)

    print("KERNEL_OK")
</pallas_src>

<mosaic_0001>
module attributes {stable_mosaic.version = 11 : i64} {
  func.func @_proto_loss_kernel(%arg0: i32, %arg1: i32, %arg2: memref<1x32x256xf32, #tpu.memory_space<vmem>>, %arg3: memref<1x1x256xi32, #tpu.memory_space<vmem>>, %arg4: memref<32x8xf32, #tpu.memory_space<vmem>>, %arg5: memref<1x1x128xf32, #tpu.memory_space<vmem>>, %arg6: memref<32x256xf32, #tpu.memory_space<vmem>>) attributes {dimension_semantics = [#tpu.dimension_semantics<parallel>, #tpu.dimension_semantics<arbitrary>], iteration_bounds = array<i64: 2, 1>, scalar_prefetch = 0 : i64, scratch_operands = 1 : i64, tpu.core_type = #tpu.core_type<tc>, window_params = [{transform_indices = @transform_0, window_bounds = array<i64: 1, 32, 256>}, {transform_indices = @transform_1, window_bounds = array<i64: 1, 1, 256>}, {pipeline_mode = #tpu.pipeline_mode<synchronous>, transform_indices = @transform_2, window_bounds = array<i64: 32, 8>}, {transform_indices = @transform_3, window_bounds = array<i64: 1, 1, 128>}]} {
    %c0_i32 = arith.constant 0 : i32
    %0 = arith.cmpi eq, %arg1, %c0_i32 : i32
    %1 = arith.extui %0 : i1 to i32
    %c0_i32_0 = arith.constant 0 : i32
    %2 = arith.cmpi ne, %1, %c0_i32_0 : i32
    scf.if %2 {
      %cst_14 = arith.constant 0.000000e+00 : f32
      %22 = vector.broadcast %cst_14 : f32 to vector<32x256xf32>
      %c0_15 = arith.constant 0 : index
      %c0_16 = arith.constant 0 : index
      %23 = vector.load %arg6[%c0_15, %c0_16] : memref<32x256xf32, #tpu.memory_space<vmem>>, vector<32x256xf32>
      tpu.vector_store %arg6[%c0_15, %c0_16], %22 {strides = array<i32>} : memref<32x256xf32, #tpu.memory_space<vmem>>, vector<32x256xf32>,
    } else {
    }
    %c0 = arith.constant 0 : index
    %c0_1 = arith.constant 0 : index
    %c0_2 = arith.constant 0 : index
    %3 = vector.load %arg3[%c0, %c0_1, %c0_2] : memref<1x1x256xi32, #tpu.memory_space<vmem>>, vector<1x1x256xi32>
    %4 = vector.shape_cast %3 : vector<1x1x256xi32> to vector<1x256xi32>
    %5 = tpu.iota {dimensions = array<i32: 0>} : vector<8x256xi32>
    %6 = vector.broadcast %4 : vector<1x256xi32> to vector<8x256xi32>
    %7 = arith.cmpi eq, %6, %5 : vector<8x256xi32>
    %8 = arith.extui %7 : vector<8x256xi1> to vector<8x256xi32>
    %9 = arith.sitofp %8 : vector<8x256xi32> to vector<8x256xf32>
    %c0_3 = arith.constant 0 : index
    %c0_4 = arith.constant 0 : index
    %10 = vector.load %arg4[%c0_3, %c0_4] : memref<32x8xf32, #tpu.memory_space<vmem>>, vector<32x8xf32>
    %cst = arith.constant dense<0.000000e+00> : vector<32x256xf32>
    %11 = tpu.matmul %10, %9, %cst {dimension_numbers = #tpu.dot_dimension_numbers<[1], [0], [0], [1], [0, 0, 1, 1], [], []>} : vector<32x8xf32>, vector<8x256xf32>, vector<32x256xf32> -> vector<32x256xf32>
    %c0_5 = arith.constant 0 : index
    %c0_6 = arith.constant 0 : index
    %c0_7 = arith.constant 0 : index
    %12 = vector.load %arg2[%c0_5, %c0_6, %c0_7] : memref<1x32x256xf32, #tpu.memory_space<vmem>>, vector<1x32x256xf32>
    %13 = vector.shape_cast %12 : vector<1x32x256xf32> to vector<32x256xf32>
    %14 = arith.subf %11, %13 : vector<32x256xf32>
    %15 = arith.mulf %14, %14 : vector<32x256xf32>
    %c0_8 = arith.constant 0 : index
    %c0_9 = arith.constant 0 : index
    %16 = vector.load %arg6[%c0_8, %c0_9] : memref<32x256xf32, #tpu.memory_space<vmem>>, vector<32x256xf32>
    %17 = arith.addf %16, %15 : vector<32x256xf32>
    %c0_10 = arith.constant 0 : index
    %c0_11 = arith.constant 0 : index
    %18 = vector.load %arg6[%c0_10, %c0_11] : memref<32x256xf32, #tpu.memory_space<vmem>>, vector<32x256xf32>
    tpu.vector_store %arg6[%c0_10, %c0_11], %17 {strides = array<i32>} : memref<32x256xf32, #tpu.memory_space<vmem>>, vector<32x256xf32>,
    %c0_i32_12 = arith.constant 0 : i32
    %19 = arith.cmpi eq, %arg1, %c0_i32_12 : i32
    %20 = arith.extui %19 : i1 to i32
    %c0_i32_13 = arith.constant 0 : i32
    %21 = arith.cmpi ne, %20, %c0_i32_13 : i32
    scf.if %21 {
      %c0_14 = arith.constant 0 : index
      %c0_15 = arith.constant 0 : index
      %22 = vector.load %arg6[%c0_14, %c0_15] : memref<32x256xf32, #tpu.memory_space<vmem>>, vector<32x256xf32>
      %23 = vector.shape_cast %22 : vector<32x256xf32> to vector<1x32x256xf32>
      %cst_16 = arith.constant dense<0.000000e+00> : vector<1xf32>
      %24 = vector.multi_reduction <add>, %23, %cst_16 [1, 2] : vector<1x32x256xf32> to vector<1xf32>
      %25 = vector.shape_cast %24 : vector<1xf32> to vector<1x1x1xf32>
      %26 = vector.extract %25[0, 0, 0] : f32 from vector<1x1x1xf32>
      %27 = vector.broadcast %26 : f32 to vector<1x1x128xf32>
      %c0_17 = arith.constant 0 : index
      %c0_18 = arith.constant 0 : index
      %c0_19 = arith.constant 0 : index
      %28 = vector.load %arg5[%c0_17, %c0_18, %c0_19] : memref<1x1x128xf32, #tpu.memory_space<vmem>>, vector<1x1x128xf32>
      tpu.vector_store %arg5[%c0_17, %c0_18, %c0_19], %27 {strides = array<i32>} : memref<1x1x128xf32, #tpu.memory_space<vmem>>, vector<1x1x128xf32>,
    } else {
    }
    return
  }
  func.func @transform_0(%arg0: i32, %arg1: i32) -> (i32, i32, i32) {
    %c0_i32 = arith.constant 0 : i32
    %c0_i32_0 = arith.constant 0 : i32
    return %arg0, %c0_i32, %arg1 : i32, i32, i32
  }
  func.func @transform_1(%arg0: i32, %arg1: i32) -> (i32, i32, i32) {
    %c0_i32 = arith.constant 0 : i32
    %c0_i32_0 = arith.constant 0 : i32
    return %arg0, %c0_i32, %arg1 : i32, i32, i32
  }
  func.func @transform_2(%arg0: i32, %arg1: i32) -> (i32, i32) {
    %c0_i32 = arith.constant 0 : i32
    %c0_i32_0 = arith.constant 0 : i32
    %c0_i32_1 = arith.constant 0 : i32
    return %c0_i32, %c0_i32_0 : i32, i32
  }
  func.func @transform_3(%arg0: i32, %arg1: i32) -> (i32, i32, i32) {
    %c0_i32 = arith.constant 0 : i32
    %c0_i32_0 = arith.constant 0 : i32
    %c0_i32_1 = arith.constant 0 : i32
    return %arg0, %c0_i32, %c0_i32_0 : i32, i32, i32
  }
}

</mosaic_0001>

<bundles_post_ra>
// kernel: tpu_custom_call.1
= control target key start
LH: loop header
LB: loop body
LE: loop exit
PB: predicated region body
PF: predicated region fallthrough
CT: control target
= control target key end

     0   :  { %8 = vsyncpa [#allocation4], 0  ;;  %s988_s0 = inlined_call_operand.hbm [shape: f32[2,32,256], index: 0, kind: input, shape index: {}]   ;;  %s989_s1 = inlined_call_operand.vmem [shape: s32[2,1,256], index: 1, kind: input, shape index: {}]   ;;  %s990_s2 = inlined_call_operand.vmem [shape: f32[32,8], index: 2, kind: input, shape index: {}]   ;;  %s991_s3 = inlined_call_operand.hbm [shape: f32[2,1,128], index: 3, kind: output, shape index: {}]  }
   0x1   :  { %10 = vsyncpa [#allocation4 + $0x1], 0 }
   0x2   :  { %11 = vsyncpa [#allocation5], 0 }
   0x3   :  { %13 = vsyncpa [#allocation5 + $0x1], 0  ;;  %s787_s12 = smov 0   ;;  %s789_s13 = smov 0  }
   0x4   :  { %s791_s14 = smov 0   ;;  %s793_s15 = smov 0  }
   0x5   :  { %s795_s16 = smov 0   ;;  %s797_s17 = smov 0  }
   0x6 LB: > { %s555_s18 = sadd.s32 4294967295, %s759_s17   ;;  %s556_s19 = sadd.s32 4294967294, %s759_s17   ;;  %s759_s17 = sphi %s797_s17, %s19_s17   ;;  %s755_s16 = sphi %s795_s16, %s1006_s16   ;;  %s751_s15 = sphi %s793_s15, %s1005_s15   ;;  %s747_s14 = sphi %s791_s14, %s1004_s14   ;;  %s743_s13 = sphi %s789_s13, %s1003_s13   ;;  %s739_s12 = sphi %s787_s12, %s1002_s12  }
   0x7   : > { %s31_s20 = sadd.s32 1, %s755_s16  ;;  %s40_s21 = sadd.s32 1, %s747_s14 }
   0x8   : > { %p33_p0 = scmp.ge.s32.totalorder %s31_s20, 2  ;;  %p47_p1 = scmp.ne.s32.totalorder %s747_s14, %s743_s13 }
   0x9   : > { %p48_p2 = scmp.eq.s32.totalorder %s759_s17, 0  ;;  %p53_p3 = scmp.ne.s32.totalorder %s743_s13, %s739_s12 }
   0xa   : > { %s1008_s20 = smov (%p33_p0, %s31_s20), 0  ;;  %p54_p5 = scmp.eq.s32.totalorder %s555_s18, 0 }
   0xb   : > { %p828_p4 = por %p48_p2, %p47_p1  ;;  %s35_s23 = ssub.s32 %s755_s16, %s1008_s20 }
   0xc   : > { %p126_p6 = scmp.eq.s32.totalorder %s555_s18, 1  ;;  %p38_p7 = scmp.eq.s32.totalorder %s35_s23, 0 }
   0xd   : > { %p834_p8 = por %p54_p5, %p53_p3  ;;  %p132_p10 = scmp.eq.s32.totalorder %s556_s19, 1 }
   0xe   : > { %p838_p9 = por %p126_p6, %p47_p1  ;;  %p593_p13 = scmp.lt.s32.totalorder %s759_s17, 2 }
   0xf   : > { %s843_s26 = scalar_select %p38_p7, %s747_s14, %s40_s21  }
  0x10   : > { %s995_s25 = scalar_select %p838_p9, 1, 0 }
  0x11   : > { %p845_p11 = por %p132_p10, %p53_p3  ;;  %s155_s28 = sand.u32 1, %s747_s14  }
  0x12   : > { %s559_s29 = sshll.u32 %s155_s28, 6  ;;  %s576_s30 = sshll.u32 %s755_s16, 10 }
  0x13   : > { %s996_s27 = scalar_select %p845_p11, 1, 0 }
  0x14   : > { %s856_s6 = scalar_lea.hbm %s988_s0, %s576_s30  ;;  %s159_s7 = scalar_lea.vmem [#allocation3], %s559_s29 }
  0x15   : > { %s168_s8 = sshll.u32 %s159_s7, 4  ;;  %p862_p0 = pnand %p593_p13, %p828_p4  ;;  %s858_s8 = int_to_ptr.vmem [resolvable:$true] %s168_s8 }
  0x16   : > { %s867_s10 = scalar_lea.sflag [#allocation4], %s155_s28  ;;  %s647_s11 = scalar_lea.hbm %s856_s6, 1024 }
  0x17   : > { %p648_p2 = scmp.ne.s32.totalorder %s856_s6, %s647_s11  ;;  %p649_p3 = pneg %p862_p0 }
  0x18   : > { %s652_s21 = scalar_lea.hbm %s988_s0, 2048  ;;  %p653_p4 = scmp.lt.u32.totalorder %s856_s6, %s988_s0 }
  0x19   : > { %p650_p5 = pnand %p649_p3, %p648_p2  ;;  %p654_p7 = scmp.lt.u32.totalorder %s652_s21, %s647_s11 }
  0x1a   : > { %p656_p13 = scmp.lt.u32.totalorder %s647_s11, %s856_s6 }
  0x1b   : > { %p651_p6 = pneg %p650_p5  ;;  %p655_p10 = por %p654_p7, %p653_p4 }
  0x1d   : > { %p657_p12 = por %p656_p13, %p655_p10 }
  0x1f   : > { %p658_p1 = pnand %p657_p12, %p651_p6 }
  0x21   : > { %661 = shalt.err (!%p658_p1)
}
  0x22   : > { %s662_s28 = scalar_lea.vmem %s858_s8, 1024  ;;  %s761_s29 = smov [#allocation3]  }
  0x23   : > { %p663_p2 = scmp.ne.s32.totalorder %s858_s8, %s662_s28  ;;  %s667_s30 = sshll.u32 %s761_s29, 4  ;;  %s668_s30 = int_to_ptr.vmem [resolvable:$false] %s667_s30 }
  0x24   : > { %s669_s4 = scalar_lea.vmem %s668_s30, 2048  ;;  %p670_p9 = scmp.lt.s32.totalorder %s858_s8, %s668_s30 }
  0x25   : > { %p665_p5 = pnand %p663_p2, %p649_p3  ;;  %p671_p4 = scmp.lt.s32.totalorder %s669_s4, %s662_s28 }
  0x27   : > { %p666_p11 = pneg %p665_p5  ;;  %p672_p7 = por %p671_p4, %p670_p9 }
  0x29   : > { %p673_p10 = pnand %p672_p7, %p666_p11 }
  0x2b   : > { %676 = shalt.err (!%p673_p10)
}
  0x2c   : > { %s762_s5 = smov 256   ;;  %s763_s7 = smov 16  }
  0x2d   : > { %588 = dma.hbm_to_vmem [thread:$0]  (!%p862_p0), %s856_s6, 1024, %s858_s8, %s867_s10, %s762_s5, %s762_s5, %s763_s7  }
  0x2e   : > { %p188_p12 = scmp.lt.s32.totalorder %s759_s17, 3  ;;  %p998_p1 = scmp.ge.s32.totalorder %s759_s17, 1 }
  0x30   : > { %p189_p3 = pnand %p998_p1, %p188_p12 }
  0x31   : > { %s899_s11 = sand.u32 (!%p189_p3), 1, %s743_s13  }
  0x32   : > { %192 = sbr.rel (%p189_p3) target bundleno = 521 (0x209), region = 32  ;;  %s563_s18 = sshll.u32 (!%p189_p3), %s899_s11, 6 }
  0x33   : > { %s195_s19 = scalar_lea.sflag (!%p189_p3), [#allocation4], %s899_s11  ;;  %s903_s21 = scalar_lea.vmem (!%p189_p3), [#allocation3], %s563_s18 }
  0x39   : > { %730 = dma.done.wait (%p834_p8), %s195_s19, 1024  }
  0x3a   : > { %732 = vsyncadd (%p834_p8), %s195_s19, 4294966272  ;;  %p230_p9 = scmp.lt.s32.totalorder %s751_s15, 1  ;;  %v251_v0 = vlaneseq  ;;  %v764_v1 = vmov 0.0   ;;  %v267_v8 = vld [vmem:[%s990_s2] sm:$0xff]  ;;  %vm271_vm2 = vcmask 64512   ;;  %v269_v9 = vld [vmem:[%s990_s2 + $0x10] sm:$0xff] }
  0x3b   : > { %348 = vmatprep.mubr.f32.mxu0 %v764_v1  ;;  %360 = vmatprep.mubr.f32.mxu1 %v764_v1  ;;  %v765_v10 = vmov 1.0   ;;  %v268_v11 = vld [vmem:[%s990_s2 + $0x8] sm:$0xff]  ;;  %v270_v12 = vld [vmem:[%s990_s2 + $0x18] sm:$0xff]  ;;  %v373_v13 = vld [vmem:[%s903_s21] sm:$0xff]  ;;  %s227_s18 = scalar_lea.vmem [#allocation6], %s899_s11  ;;  %p999_p11 = scmp.ne.s32.totalorder %s995_s25, 0 }
  0x3c   : > { %s231_s6 = scalar_select %p230_p9, %s751_s15, 1  ;;  %v252_v2 = vshrl.u32 %v251_v0, 7  ;;  %v374_v14 = vld [vmem:[%s903_s21 + $0x8] sm:$0xff]  ;;  %v375_v21 = vld [vmem:[%s903_s21 + $0x10] sm:$0xff]  ;;  %v377_v22 = vld [vmem:[%s903_s21 + $0x20] sm:$0xff] }
  0x3d   : > { %v376_v24 = vld [vmem:[%s903_s21 + $0x18] sm:$0xff]  ;;  %v378_v34 = vld [vmem:[%s903_s21 + $0x28] sm:$0xff]  ;;  %v379_v35 = vld [vmem:[%s903_s21 + $0x30] sm:$0xff]  ;;  %s463_s19 = sshll.u32 %s227_s18, 4  ;;  %s936_s19 = int_to_ptr.vmem [resolvable:$true] %s463_s19 }
  0x3e   : > { %s564_s8 = sshll.u32 %s231_s6, 1  ;;  %v259_v3 = vsub.s32 1, %v252_v2  ;;  %v255_v4 = vsub.s32 0, %v252_v2  ;;  %v380_v42 = vld [vmem:[%s903_s21 + $0x38] sm:$0xff]  ;;  %s573_s21 = sshll.u32 %s751_s15, 4 }
  0x3f   : > { %s236_s22 = scalar_lea.vmem %s989_s1, %s564_s8  ;;  %s941_s10 = scalar_lea.hbm %s991_s3, %s573_s21 }
  0x40   : > { %v250_v5 = vld [vmem:[%s236_s22] sm:$0x3]  ;;  %s451_s22 = scalar_lea.sflag [#allocation5], %s899_s11  ;;  %s677_s24 = scalar_lea.vmem %s936_s19, 16 }
  0x41   : > { %v260_v6 = vrot.slane %v250_v5, %v259_v3  ;;  %v256_v7 = vrot.slane %v250_v5, %v255_v4  ;;  %p678_p8 = scmp.ne.s32.totalorder %s936_s19, %s677_s24  ;;  %s766_s15 = smov [#allocation6]  }
  0x42   : > { %s681_s23 = sshll.u32 %s766_s15, 4  ;;  %s682_s23 = int_to_ptr.vmem [resolvable:$false] %s681_s23 }
  0x43   : > { %vm262_vm0 = vcmp.eq.s32.totalorder %v260_v6, %v252_v2  ;;  %vm261_vm1 = vcmp.eq.s32.totalorder %v256_v7, %v252_v2  ;;  %p679_p0 = pnand %p678_p8, %p999_p11  ;;  %s683_s28 = scalar_lea.vmem %s682_s23, 32 }
  0x44   : > { %567 = vmatprep.subr.msk.mxu0 %vm262_vm0, %v765_v10  ;;  %577 = vmatprep.subr.msk.mxu1 %vm262_vm0, %v765_v10  ;;  %p684_p13 = scmp.lt.s32.totalorder %s936_s19, %s682_s23  ;;  %p685_p2 = scmp.lt.s32.totalorder %s683_s28, %s677_s24 }
  0x45   : > { %568 = vmatpush1.msk.msra.mxu0 %vm261_vm1, %v765_v10  ;;  %578 = vmatpush1.msk.msra.mxu1 %vm261_vm1, %v765_v10  ;;  %p680_p6 = pneg %p679_p0 }
  0x46   : > { %569 = vmatmul.mubr.msk.f32.vlgmr.msra.gmra.mrb[0].mxu0 %vm271_vm2, %v267_v8  ;;  %571 = vmatmul.mubr.msk.f32.vlgmr.msra.gmra.mrb[0].mxu1 %vm271_vm2, %v269_v9  ;;  %p686_p5 = por %p685_p2, %p684_p13 }
  0x47   : > { %354 = vmatprep.mubr.f32.mxu0 %v764_v1  ;;  %366 = vmatprep.mubr.f32.mxu1 %v764_v1 }
  0x48   : > { %p687_p4 = pnand %p686_p5, %p680_p6 }
  0x4a   : > { %570 = vmatmul.mubr.msk.f32.gmra.mrb[2].mxu0 %vm271_vm2, %v268_v11  ;;  %572 = vmatmul.mubr.msk.f32.gmra.mrb[2].mxu1 %vm271_vm2, %v270_v12 }
 0x119   : > { %v350_v15 = vpop.f32.mrb[0].mxu0  ;;  %v362_v16 = vpop.f32.mrb[0].mxu1 }
 0x11a   : > { %v381_v17 = vsub.f32 %v350_v15, %v373_v13  ;;  %v352_v18 = vpop.f32.mrb[1].mxu0  ;;  %v364_v19 = vpop.f32.mrb[1].mxu1  ;;  %v385_v30 = vsub.f32 %v362_v16, %v377_v22 }
 0x11b   : > { %v382_v20 = vsub.f32 %v352_v18, %v374_v14  ;;  %v386_v40 = vsub.f32 %v364_v19, %v378_v34 }
 0x11c   : > { %v389_v23 = vmul.f32 %v381_v17, %v381_v17  ;;  %v393_v39 = vmul.f32 %v385_v30, %v385_v30 }
 0x11d   : > { %v390_v25 = vmul.f32 %v382_v20, %v382_v20  ;;  %v356_v26 = vpop.f32.mrb[2].mxu0  ;;  %v368_v27 = vpop.f32.mrb[2].mxu1  ;;  %v394_v45 = vmul.f32 %v386_v40, %v386_v40 }
 0x11e   : > { %v383_v28 = vsub.f32 %v356_v26, %v375_v21  ;;  %v358_v29 = vpop.f32.mrb[3].mxu0  ;;  %v370_v31 = vpop.f32.mrb[3].mxu1  ;;  %v387_v41 = vsub.f32 %v368_v27, %v379_v35 }
 0x11f   : > { %v432_v32 = vadd.f32 %v390_v25, %v389_v23  ;;  %v384_v33 = vsub.f32 %v358_v29, %v376_v24  ;;  %v388_v47 = vsub.f32 %v370_v31, %v380_v42 }
 0x120   : > { %v391_v36 = vmul.f32 %v383_v28, %v383_v28  ;;  %v395_v46 = vmul.f32 %v387_v41, %v387_v41 }
 0x121   : > { %v392_v37 = vmul.f32 %v384_v33, %v384_v33  ;;  %v396_v49 = vmul.f32 %v388_v47, %v388_v47 }
 0x122   : > { %v433_v38 = vadd.f32 %v432_v32, %v391_v36 }
 0x124   : > { %v434_v43 = vadd.f32 %v433_v38, %v392_v37 }
 0x126   : > { %v435_v44 = vadd.f32 %v434_v43, %v393_v39 }
 0x128   : > { %v436_v48 = vadd.f32 %v435_v44, %v394_v45 }
 0x12a   : > { %v437_v50 = vadd.f32 %v436_v48, %v395_v46 }
 0x12c   : > { %v438_v51 = vadd.f32 %v437_v50, %v396_v49 }
 0x12e   : > { %439 = vadd.xlane.f32.xlu0 %v438_v51 }
 0x1bb   : > { %v440_v52 = vpop.xlane.xlu0 %439 }
 0x1bc   : > { %v441_v53 = vrot.slane %v440_v52, 4 }
 0x1be   : > { %v442_v54 = vadd.f32 %v441_v53, %v440_v52 }
 0x1c0   : > { %v443_v55 = vrot.slane %v442_v54, 2 }
 0x1c2   : > { %v444_v56 = vadd.f32 %v443_v55, %v442_v54 }
 0x1c4   : > { %v445_v57 = vrot.slane %v444_v56, 1 }
 0x1c6   : > { %v446_v58 = vadd.f32 %v445_v57, %v444_v56 }
 0x1c8   : > { %579 = vpush %v446_v58 }
 0x1f9   : > { %s580_s6 = spop %579 }
 0x1fa   : > { %v448_v59 = vstv %s580_s6 }
 0x1fb   : > { %449 = vst [vmem:[%s227_s18] sm:$0x1] %v448_v59 }
 0x1fc   : > { %690 = shalt.err (!%p687_p4)
}
 0x1fd   : > { %s691_s11 = scalar_lea.hbm %s941_s10, 16  ;;  %s695_s4 = scalar_lea.hbm %s991_s3, 32 }
 0x1fe   : > { %p692_p7 = scmp.ne.s32.totalorder %s941_s10, %s691_s11  ;;  %p696_p1 = scmp.lt.u32.totalorder %s941_s10, %s991_s3 }
 0x1ff   : > { %p697_p3 = scmp.lt.u32.totalorder %s695_s4, %s691_s11  ;;  %p699_p8 = scmp.lt.u32.totalorder %s691_s11, %s941_s10 }
 0x200   : > { %p693_p10 = pnand %p692_p7, %p999_p11 }
 0x201   : > { %p698_p9 = por %p697_p3, %p696_p1 }
 0x202   : > { %p694_p12 = pneg %p693_p10 }
 0x203   : > { %p700_p0 = por %p699_p8, %p698_p9 }
 0x205   : > { %p701_p6 = pnand %p700_p0, %p694_p12 }
 0x207   : > { %704 = shalt.err (!%p701_p6)
}
 0x208   : > { %583 = dma.vmem_to_hbm [thread:$0]  (%p999_p11), %s936_s19, 16, %s941_s10, %s451_s22  }
 0x209 PF: > { %s475_s18 = sand.u32 1, %s739_s12   ;;  %p1000_p13 = scmp.ne.s32.totalorder %s996_s27, 0 }
 0x20a   : > { %p1001_p2 = scmp.ge.s32.totalorder %s759_s17, 2  ;;  %s476_s21 = scalar_lea.sflag [#allocation5], %s475_s18 }
 0x20c   : > { %p590_p5 = pnand %p1001_p2, %p1000_p13 }
 0x20e   : > { %734 = dma.done.wait (!%p590_p5), %s476_s21, 16  }
 0x20f   : > { %736 = vsyncadd (!%p590_p5), %s476_s21, 4294967280  ;;  %s19_s17 = sadd.s32 1, %s759_s17   ;;  %s1002_s12 = smov %s743_s13 }
 0x210   : > { %p16_p4 = scmp.ge.s32.totalorder %s19_s17, 4   ;;  %s1003_s13 = smov %s747_s14 }
 0x211   : > { %s1004_s14 = smov %s843_s26  ;;  %s1005_s15 = smov %s755_s16 }
 0x212   : > { %s1006_s16 = smov %s1008_s20  ;;  %18 = sbr.rel (!%p16_p4) target bundleno = 6 (0x6), region = 88 }
 0x219   :  { %480 = vsyncpa [#allocation4], 1 }
 0x21a   :  { %482 = vsyncpa [#allocation4 + $0x1], 1 }
 0x21b   :  { %483 = vsyncpa [#allocation5], 1 }
 0x21c   :  { %485 = vsyncpa [#allocation5 + $0x1], 1 }

</bundles_post_ra>
